<compile_context>
chip_gen: v5e
topology: v5e:2x2
jax: 0.10.0
libtpu: 0.0.40
codegen_flags: <defaults>
</compile_context>

<pallas_src>
import math

import jax
import jax.numpy as jnp
from jax.experimental import pallas as pl
from jax.experimental.pallas import tpu as pltpu

_LANES = 128
_MAX_PACK_LANES = 1024                 # cap on lcm(A, 128) for the packed path
_MIN_SPLIT_ROWS = 64                   # below this, misaligned inputs use row-sum
_TARGET_TILE_BYTES = 2 * 1024 * 1024   # ~2 MiB per (double-buffered) input block

_COMPILER_PARAMS = pltpu.CompilerParams(
    dimension_semantics=("parallel",),
    vmem_limit_bytes=32 * 1024 * 1024,
)


def _round_up(x, m):
    return (x + m - 1) // m * m


def _choose_row_tile(rows, lane_elems, itemsize):
    """Rows per grid step.

    ~_TARGET_TILE_BYTES per input buffer (amortizes the ~0.35us per-step
    overhead), capped so the grid has >= 2 steps whenever possible (so the
    "parallel" axis shards across both v7x TensorCores), and kept a multiple
    of 8 (sublane rule) unless it equals the full row count.
    """
    if rows <= 8:
        return max(rows, 1)
    budget = max(8, (_TARGET_TILE_BYTES // (lane_elems * itemsize)) // 8 * 8)
    two_step = _round_up(pl.cdiv(rows, 2), 8)
    return max(8, min(budget, two_step))


def _make_packed_kernel(a, lanes, groups, x_dtype):
    """Segment-sum of `a`-consecutive-lane groups via bf16 MXU matmul(s).

    x_ref: (TR, lanes) packed rows, each holding lanes//a groups of `a`
           consecutive agent Q-values.
    o_ref: (TR, groups) per-group sums (row-local, so ragged blocks are safe).
    """
    bf16_input = jnp.dtype(x_dtype) == jnp.bfloat16

    def kernel(x_ref, o_ref):
        # 0/1 segment matrix, generated on the (idle) VPU: w[l, g] = (l // a == g).
        lane = jax.lax.broadcasted_iota(jnp.int32, (lanes, groups), 0)
        grp = jax.lax.broadcasted_iota(jnp.int32, (lanes, groups), 1)
        w = (lane // a == grp).astype(jnp.bfloat16)

        x = x_ref[...]
        if bf16_input:
            chunks = (x,)                       # single bf16 MXU pass, no up-cast
        else:
            xf = x.astype(jnp.float32)
            hi = xf.astype(jnp.bfloat16)
            r1 = xf - hi.astype(jnp.float32)    # exact (Sterbenz)
            mid = r1.astype(jnp.bfloat16)
            lo = (r1 - mid.astype(jnp.float32)).astype(jnp.bfloat16)
            chunks = (hi, mid, lo)              # ~f32-exact against 0/1 weights

        acc = jnp.dot(chunks[0], w, preferred_element_type=jnp.float32)
        for c in chunks[1:]:
            acc = acc + jnp.dot(c, w, preferred_element_type=jnp.float32)
        o_ref[...] = acc.astype(o_ref.dtype)

    return kernel


def _packed_call(xp, a, lanes, groups, out_dtype):
    rows = xp.shape[0]
    tr = _choose_row_tile(rows, lanes, jnp.dtype(xp.dtype).itemsize)
    return pl.pallas_call(
        _make_packed_kernel(a, lanes, groups, xp.dtype),
        out_shape=jax.ShapeDtypeStruct((rows, groups), out_dtype),
        grid_spec=pltpu.PrefetchScalarGridSpec(
            num_scalar_prefetch=0,
            grid=(pl.cdiv(rows, tr),),
            in_specs=[pl.BlockSpec((tr, lanes), lambda i: (i, 0))],
            out_specs=pl.BlockSpec((tr, groups), lambda i: (i, 0)),
        ),
        compiler_params=_COMPILER_PARAMS,
    )(xp)


def _rowsum_kernel(q_ref, o_ref):
    q = q_ref[...].astype(jnp.float32)
    o_ref[...] = jnp.sum(q, axis=-1, keepdims=True).astype(o_ref.dtype)


def _rowsum_call(q2, out_dtype):
    n, a = q2.shape
    tr = _choose_row_tile(n, _round_up(a, _LANES), jnp.dtype(q2.dtype).itemsize)
    return pl.pallas_call(
        _rowsum_kernel,
        out_shape=jax.ShapeDtypeStruct((n, 1), out_dtype),
        grid_spec=pltpu.PrefetchScalarGridSpec(
            num_scalar_prefetch=0,
            grid=(pl.cdiv(n, tr),),
            in_specs=[pl.BlockSpec((tr, a), lambda i: (i, 0))],
            out_specs=pl.BlockSpec((tr, 1), lambda i: (i, 0)),
        ),
        compiler_params=_COMPILER_PARAMS,
    )(q2)


def vdn_mixing_network(q):
    """Pallas implementation of VdnMixingNetwork.forward.

    q: [..., A] float array. Returns [..., 1] = sum over the last (agent) axis.
    """
    lead = q.shape[:-1]
    a = q.shape[-1]
    n = 1
    for d in lead:
        n *= d
    out_dtype = q.dtype

    if n == 0 or a == 0:
        return jnp.zeros((*lead, 1), out_dtype)
    if a == 1:
        return q  # sum over a singleton axis is the identity (already keepdim shape)

    lanes = a * _LANES // math.gcd(a, _LANES)  # lcm(A, 128): lane-dense row width
    if lanes <= _MAX_PACK_LANES:
        groups = lanes // a
        total = n * a
        rows = total // lanes
        rem = total - rows * lanes             # multiple of A, < lanes

        if rem == 0:
            # Fully aligned: contiguous reshape is free (no pad / extra HBM pass);
            # a ragged last grid block is masked by Pallas on writeback.
            out = _packed_call(q.reshape(rows, lanes), a, lanes, groups, out_dtype)
            return out.reshape(*lead, 1)

        if rows >= _MIN_SPLIT_ROWS:
            # Large but misaligned: packed kernel on the aligned prefix, tiny
            # jnp.sum on the (< lanes-element) tail.
            # TODO(synk): the prefix slice materializes one extra copy of the main
            # body; only taken when numel % lcm(A, 128) != 0.
            flat = q.reshape(total)
            main = flat[: rows * lanes].reshape(rows, lanes)
            out_main = _packed_call(main, a, lanes, groups, out_dtype).reshape(-1)
            tail = flat[rows * lanes:].reshape(-1, a)
            out_tail = jnp.sum(tail.astype(jnp.float32), axis=-1).astype(out_dtype)
            return jnp.concatenate([out_main, out_tail]).reshape(*lead, 1)

    # Tiny inputs or very awkward A: tiled row-sum over the natural (n, A) view
    # (no wrapper-side copies; lane-sparse, but negligible at these sizes).
    return _rowsum_call(q.reshape(n, a), out_dtype).reshape(*lead, 1)


if __name__ == "__main__":
    def _check(q, name, atol=1e-5, rtol=1e-5):
        out = jax.block_until_ready(vdn_mixing_network(q))
        ref = jnp.sum(q.astype(jnp.float32), axis=-1, keepdims=True).astype(q.dtype)
        assert out.shape == (*q.shape[:-1], 1), (name, out.shape)
        assert jnp.allclose(out.astype(jnp.float32), ref.astype(jnp.float32),
                            atol=atol, rtol=rtol), f"mismatch vs reference ({name})"

    key = jax.random.PRNGKey(0)
    keys = jax.random.split(key, 8)

    # Module-typical small shape: batch=2, timesteps=8, n_agents=4 (row-sum path).
    _check(jax.random.normal(keys[0], (2, 8, 4), jnp.float32), "small")

    # Large aligned shape: packed MXU path, multi-step grid, no wrapper copies.
    _check(jax.random.normal(keys[1], (8, 8192, 4), jnp.float32), "medium")

    # bf16 inputs: single-pass bf16 MXU path (no up-cast, no split).
    _check(jax.random.normal(keys[2], (4, 8192, 4), jnp.float32).astype(jnp.bfloat16),
           "bf16", atol=5e-2, rtol=5e-2)

    # A does not divide 128 (A=6): lcm-packed path with 384-lane rows.
    _check(jax.random.normal(keys[3], (4, 4096, 6), jnp.float32), "odd_A_packed")

    # A does not divide 128, tiny input: row-sum fallback.
    _check(jax.random.normal(keys[4], (2, 8, 6), jnp.float32), "odd_A_small")

    # numel not a multiple of lcm(A,128): aligned prefix through the kernel,
    # <128-element tail via jnp.sum.
    _check(jax.random.normal(keys[5], (2, 5003, 4), jnp.float32), "ragged_tail")

    print("KERNEL_OK")
</pallas_src>

<mosaic_0001>
module attributes {stable_mosaic.version = 11 : i64} {
  func.func @_rowsum_kernel(%arg0: i32, %arg1: memref<8x4xf32, #tpu.memory_space<vmem>>, %arg2: memref<8x1xf32, #tpu.memory_space<vmem>>) attributes {dimension_semantics = [#tpu.dimension_semantics<parallel>], iteration_bounds = array<i64: 2>, scalar_prefetch = 0 : i64, scratch_operands = 0 : i64, tpu.core_type = #tpu.core_type<tc>, window_params = [{transform_indices = @transform_0, window_bounds = array<i64: 8, 4>}, {transform_indices = @transform_1, window_bounds = array<i64: 8, 1>}]} {
    %c0 = arith.constant 0 : index
    %c0_0 = arith.constant 0 : index
    %0 = vector.load %arg1[%c0, %c0_0] : memref<8x4xf32, #tpu.memory_space<vmem>>, vector<8x4xf32>
    %cst = arith.constant dense<0.000000e+00> : vector<8xf32>
    %1 = vector.multi_reduction <add>, %0, %cst [1] : vector<8x4xf32> to vector<8xf32>
    %2 = vector.shape_cast %1 : vector<8xf32> to vector<8x1xf32>
    %c0_1 = arith.constant 0 : index
    %c0_2 = arith.constant 0 : index
    %3 = vector.load %arg2[%c0_1, %c0_2] : memref<8x1xf32, #tpu.memory_space<vmem>>, vector<8x1xf32>
    tpu.vector_store %arg2[%c0_1, %c0_2], %2 {strides = array<i32>} : memref<8x1xf32, #tpu.memory_space<vmem>>, vector<8x1xf32>,
    return
  }
  func.func @transform_0(%arg0: i32) -> (i32, i32) {
    %c0_i32 = arith.constant 0 : i32
    %c0_i32_0 = arith.constant 0 : i32
    return %arg0, %c0_i32 : i32, i32
  }
  func.func @transform_1(%arg0: i32) -> (i32, i32) {
    %c0_i32 = arith.constant 0 : i32
    %c0_i32_0 = arith.constant 0 : i32
    return %arg0, %c0_i32 : i32, i32
  }
}

</mosaic_0001>

<bundles_post_ra>
// kernel: tpu_custom_call.1
= control target key start
LH: loop header
LB: loop body
LE: loop exit
PB: predicated region body
PF: predicated region fallthrough
CT: control target
= control target key end

     0   :  { %s193_s6 = smov 0   ;;  %s213_s0 = inlined_call_operand.vmem [shape: f32[16,4], index: 0, kind: input, shape index: {}]   ;;  %s214_s1 = inlined_call_operand.vmem [shape: f32[16,1], index: 1, kind: output, shape index: {}]  }
   0x1 LB: > { %s172_s7 = sadd.s32 4294967295, %s195_s6   ;;  %p176_p0 = scmp.ge.s32.totalorder %s195_s6, 1  ;;  %s195_s6 = sphi %s193_s6, %s11_s6  }
   0x2   : > { %p86_p1 = scmp.lt.s32.totalorder %s195_s6, 3 }
   0x4   : > { %p87_p2 = pnand %p176_p0, %p86_p1 }
   0x5   : > { %p104_p3 = scmp.lt.s32.totalorder (!%p87_p2), %s172_s7, 1 }
   0x6   : > { %90 = sbr.rel (%p87_p2) target bundleno = 133 (0x85), region = 24 }
   0xb   : > { %s216_s7 = smov (!%p104_p3, %s172_s7), 1  ;;  %vm113_vm0 = vcmask 31744   ;;  %vm117_vm1 = vcmask 7168  }
   0xc   : > { %s177_s8 = sshll.u32 %s216_s7, 3 }
   0xd   : > { %s107_s11 = scalar_lea.vmem %s213_s0, %s177_s8  ;;  %s111_s14 = scalar_lea.vmem %s214_s1, %s177_s8 }
   0xe   : > { %v112_v0 = vld [vmem:[%s107_s11] sm:$0xff] }
   0xf   : > { %v114_v1 = vsel %vm113_vm0, %v112_v0, 0.0 }
  0x10   : > { %115 = vadd.xlane.f32.xlu0 %v114_v1 }
  0x83   : > { %v116_v2 = vpop.xlane.xlu0 %115 }
  0x84   : > { %118 = vst.msk [vmem:[%s111_s14] sm:$0xff] %vm117_vm1, %v116_v2 }
  0x85 PF: > { %s11_s6 = sadd.s32 1, %s195_s6  }
  0x86   : > { %p8_p4 = scmp.ge.s32.totalorder %s11_s6, 4  }
  0x88   :  { %10 = sbr.rel (!%p8_p4) target bundleno = 1 (0x1), region = 54 }

</bundles_post_ra>
